<compile_context>
chip_gen: v7x
topology: tpu7x:2x2x1
jax: 0.10.0
libtpu: 0.0.40
codegen_flags: <defaults>
</compile_context>

<pallas_src>
import math

import jax
import jax.numpy as jnp
from jax import lax
from jax.experimental import pallas as pl
from jax.experimental.pallas import tpu as pltpu

# ---- module hyper-parameters (small, consistent with the forward pass) ----
D_MODEL = 32
HIDDEN = 4 * D_MODEL      # 128 -> exactly one lane width, MXU/lane friendly
BATCH = 2
SEQ_LEN = 8


def _round_up(n, m):
    return ((n + m - 1) // m) * m


def feedforward_forward(x, w1, b1, w2, b2, *, block_rows=None, mxu_dtype=None,
                        dropout_p=0.0):
    """FeedforwardNetwork forward pass.

    x  : (B, T, D)
    w1 : (D, 4D)   first Linear weight, pre-transposed (in, out)  [lane-dense]
    b1 : (4D,)
    w2 : (D, 4D)   second Linear weight in natural torch layout (out, in)
                   [kept lane-dense; contracted on its last dim in-kernel]
    b2 : (D,)

    block_rows : rows per grid step (None => all of M in one step).  For v7x,
                 pass M//2 (multiple of 8 f32 / 16 bf16) at large M to shard
                 the "parallel" row axis across the two TensorCores; keep None
                 on single-TC v5e/v6e.
    mxu_dtype  : e.g. jnp.bfloat16 to feed the MXU narrow inputs with f32
                 accumulation (v6e/v7x default once M scales).
    """
    # Dropout is identity at inference time.
    assert dropout_p == 0.0, "eval-mode only"  # TODO(synk): training dropout

    B, T, D = x.shape
    H = w1.shape[1]
    assert w1.shape == (D, H) and w2.shape == (D, H)
    assert b1.shape == (H,) and b2.shape == (D,)
    M = B * T

    dtype = x.dtype if mxu_dtype is None else jnp.dtype(mxu_dtype)

    # ---- pack all parameters into one lane-dense (P, H) slab ---------------
    # (In a real model this packing happens once at init, not per call.)
    # Bands start on 16-row boundaries so both f32 (8-row) and bf16 (16-row)
    # sublane packing stay aligned.
    b1_row = _round_up(2 * D, 16)
    b2_row = b1_row + 16
    P = b2_row + 16
    params = jnp.zeros((P, H), dtype)
    params = params.at[0:D, :].set(w1.astype(dtype))
    params = params.at[D:2 * D, :].set(w2.astype(dtype))
    params = params.at[b1_row, :].set(b1.astype(dtype))
    params = params.at[b2_row, 0:D].set(b2.astype(dtype))

    x2 = x.reshape(M, D).astype(dtype)

    # ---- row tiling ---------------------------------------------------------
    tm = M if block_rows is None else block_rows
    min_rows = 16 if dtype == jnp.bfloat16 else 8
    if tm != M:
        if M % tm != 0:
            raise ValueError(f"block_rows={tm} must divide M={M}")
        if tm % min_rows != 0:
            raise ValueError(
                f"block_rows={tm} must be a multiple of {min_rows} for {dtype}")
    grid = (M // tm,)

    def kernel(x_ref, p_ref, o_ref):
        # Static views into the packed parameter slab (zero runtime cost).
        w1v = p_ref[0:D, :]                                    # (D, H)
        w2v = p_ref[D:2 * D, :]                                # (D, H) natural
        b1v = p_ref[b1_row:b1_row + 1, :].astype(jnp.float32)  # (1, H)
        b2v = p_ref[b2_row:b2_row + 1, 0:D].astype(jnp.float32)  # (1, D)

        xv = x_ref[...]                                        # (tm, D)

        # Linear 1 + ReLU: MXU pass, f32 accumulate; bias/ReLU in f32 on VPU.
        h = jnp.dot(xv, w1v, preferred_element_type=jnp.float32)  # (tm, H)
        h = jnp.maximum(h + b1v, 0.0)

        # Linear 2: contract last dims of both operands -> no W2 transpose.
        out = lax.dot_general(
            h.astype(w2v.dtype), w2v,
            dimension_numbers=(((1,), (1,)), ((), ())),
            preferred_element_type=jnp.float32)                # (tm, D)
        out = out + b2v

        # Dropout: identity at inference.
        o_ref[...] = out.astype(o_ref.dtype)                   # whole-view store

    out = pl.pallas_call(
        kernel,
        out_shape=jax.ShapeDtypeStruct((M, D), dtype),
        grid_spec=pl.GridSpec(
            grid=grid,
            in_specs=[
                pl.BlockSpec((tm, D), lambda i: (i, 0)),   # x row tile
                pl.BlockSpec((P, H), lambda i: (0, 0)),    # packed params (1 DMA)
            ],
            out_specs=pl.BlockSpec((tm, D), lambda i: (i, 0)),
        ),
        compiler_params=pltpu.CompilerParams(
            dimension_semantics=("parallel",)),   # row axis shards on v7x TCs
    )(x2, params)
    return out.reshape(B, T, D)


def _reference(x, w1, b1, w2, b2):
    """Pure-JAX reference mirroring the PyTorch forward (eval mode)."""
    h = jnp.maximum(x @ w1 + b1, 0.0)       # Linear(d, 4d) + ReLU
    return h @ w2.T + b2                     # Linear(4d, d); w2 is (out, in)


if __name__ == "__main__":
    key = jax.random.PRNGKey(0)
    kx, kw1, kb1, kw2, kb2 = jax.random.split(key, 5)

    x = jax.random.normal(kx, (BATCH, SEQ_LEN, D_MODEL), dtype=jnp.float32)

    # nn.Linear-like uniform init.  w1 pre-transposed (in, out); w2 natural
    # torch layout (out, in) = (D, 4D) -- both lane-dense (minor dim = 128).
    sc1 = 1.0 / math.sqrt(D_MODEL)
    sc2 = 1.0 / math.sqrt(HIDDEN)
    w1 = jax.random.uniform(kw1, (D_MODEL, HIDDEN), jnp.float32, -sc1, sc1)
    b1 = jax.random.uniform(kb1, (HIDDEN,), jnp.float32, -sc1, sc1)
    w2 = jax.random.uniform(kw2, (D_MODEL, HIDDEN), jnp.float32, -sc2, sc2)
    b2 = jax.random.uniform(kb2, (D_MODEL,), jnp.float32, -sc2, sc2)

    ref = _reference(x, w1, b1, w2, b2)

    # f32 path (default) -- tight check.
    out = feedforward_forward(x, w1, b1, w2, b2)
    out = jax.block_until_ready(out)
    assert out.shape == (BATCH, SEQ_LEN, D_MODEL)
    assert jnp.allclose(out, ref, atol=1e-5, rtol=1e-5)

    # bf16 MXU-input / f32-accumulate path (v6e/v7x default at scale).
    out_bf16 = feedforward_forward(x, w1, b1, w2, b2, mxu_dtype=jnp.bfloat16)
    out_bf16 = jax.block_until_ready(out_bf16)
    assert jnp.allclose(out_bf16.astype(jnp.float32), ref, atol=5e-2, rtol=5e-2)

    print("KERNEL_OK")
</pallas_src>

<mosaic_0001>
module attributes {stable_mosaic.version = 11 : i64} {
  func.func @kernel(%arg0: i32, %arg1: memref<16x32xf32, #tpu.memory_space<vmem>>, %arg2: memref<96x128xf32, #tpu.memory_space<vmem>>, %arg3: memref<16x32xf32, #tpu.memory_space<vmem>>) attributes {dimension_semantics = [#tpu.dimension_semantics<parallel>], iteration_bounds = array<i64: 1>, scalar_prefetch = 0 : i64, scratch_operands = 0 : i64, tpu.core_type = #tpu.core_type<tc>, window_params = [{transform_indices = @transform_0, window_bounds = array<i64: 16, 32>}, {pipeline_mode = #tpu.pipeline_mode<synchronous>, transform_indices = @transform_1, window_bounds = array<i64: 96, 128>}, {transform_indices = @transform_2, window_bounds = array<i64: 16, 32>}]} {
    %c0 = arith.constant 0 : index
    %c0_0 = arith.constant 0 : index
    %0 = vector.load %arg2[%c0, %c0_0] : memref<96x128xf32, #tpu.memory_space<vmem>>, vector<32x128xf32>
    %c32 = arith.constant 32 : index
    %c0_1 = arith.constant 0 : index
    %1 = vector.load %arg2[%c32, %c0_1] : memref<96x128xf32, #tpu.memory_space<vmem>>, vector<32x128xf32>
    %c64 = arith.constant 64 : index
    %c0_2 = arith.constant 0 : index
    %2 = vector.load %arg2[%c64, %c0_2] : memref<96x128xf32, #tpu.memory_space<vmem>>, vector<1x128xf32>
    %c80 = arith.constant 80 : index
    %c0_3 = arith.constant 0 : index
    %3 = vector.load %arg2[%c80, %c0_3] : memref<96x128xf32, #tpu.memory_space<vmem>>, vector<1x32xf32>
    %c0_4 = arith.constant 0 : index
    %c0_5 = arith.constant 0 : index
    %4 = vector.load %arg1[%c0_4, %c0_5] : memref<16x32xf32, #tpu.memory_space<vmem>>, vector<16x32xf32>
    %cst = arith.constant dense<0.000000e+00> : vector<16x128xf32>
    %5 = tpu.matmul %4, %0, %cst {dimension_numbers = #tpu.dot_dimension_numbers<[1], [0], [0], [1], [0, 0, 1, 1], [], []>} : vector<16x32xf32>, vector<32x128xf32>, vector<16x128xf32> -> vector<16x128xf32>
    %6 = vector.broadcast %2 : vector<1x128xf32> to vector<16x128xf32>
    %7 = arith.addf %5, %6 : vector<16x128xf32>
    %cst_6 = arith.constant 0.000000e+00 : f32
    %8 = vector.broadcast %cst_6 : f32 to vector<16x128xf32>
    %9 = arith.maximumf %7, %8 : vector<16x128xf32>
    %cst_7 = arith.constant dense<0.000000e+00> : vector<16x32xf32>
    %10 = tpu.matmul %9, %1, %cst_7 {dimension_numbers = #tpu.dot_dimension_numbers<[1], [1], [0], [0], [0, 0, 1, 0], [], []>} : vector<16x128xf32>, vector<32x128xf32>, vector<16x32xf32> -> vector<16x32xf32>
    %11 = vector.broadcast %3 : vector<1x32xf32> to vector<16x32xf32>
    %12 = arith.addf %10, %11 : vector<16x32xf32>
    %c0_8 = arith.constant 0 : index
    %c0_9 = arith.constant 0 : index
    %13 = vector.load %arg3[%c0_8, %c0_9] : memref<16x32xf32, #tpu.memory_space<vmem>>, vector<16x32xf32>
    tpu.vector_store %arg3[%c0_8, %c0_9], %12 {strides = array<i32>} : memref<16x32xf32, #tpu.memory_space<vmem>>, vector<16x32xf32>,
    return
  }
  func.func @transform_0(%arg0: i32) -> (i32, i32) {
    %c0_i32 = arith.constant 0 : i32
    %c0_i32_0 = arith.constant 0 : i32
    return %arg0, %c0_i32 : i32, i32
  }
  func.func @transform_1(%arg0: i32) -> (i32, i32) {
    %c0_i32 = arith.constant 0 : i32
    %c0_i32_0 = arith.constant 0 : i32
    %c0_i32_1 = arith.constant 0 : i32
    return %c0_i32, %c0_i32_0 : i32, i32
  }
  func.func @transform_2(%arg0: i32) -> (i32, i32) {
    %c0_i32 = arith.constant 0 : i32
    %c0_i32_0 = arith.constant 0 : i32
    return %arg0, %c0_i32 : i32, i32
  }
}

</mosaic_0001>

<bundles_post_ra>
// kernel: tpu_custom_call.1
= control target key start
LH: loop header
LB: loop body
LE: loop exit
PB: predicated region body
PF: predicated region fallthrough
CT: control target
= control target key end

     0   :  { %7 = vsyncpa [#allocation3], 0  ;;  %s439_s0 = inlined_call_operand.hbm [shape: f32[16,32], index: 0, kind: input, shape index: {}]   ;;  %s440_s1 = inlined_call_operand.hbm [shape: f32[96,128], index: 1, kind: input, shape index: {}]   ;;  %s441_s2 = inlined_call_operand.hbm [shape: f32[16,32], index: 2, kind: output, shape index: {}]  }
   0x1   :  { %8 = vsyncpa [#allocation6], 0 }
   0x2   :  { %9 = vsyncpa [#allocation4], 0  ;;  %s370_s9 = smov [#allocation2]   ;;  %s298_s13 = scalar_lea.hbm %s439_s0, 256 }
   0x3   :  { %s15_s10 = sshll.u32 %s370_s9, 4  ;;  %p299_p0 = scmp.ne.s32.totalorder %s439_s0, %s298_s13  ;;  %s16_s10 = int_to_ptr.vmem [resolvable:$true] %s15_s10 }
   0x4   :  { %p302_p1 = scmp.lt.u32.totalorder %s298_s13, %s439_s0 }
   0x6   :  { %p304_p2 = pnand %p302_p1, %p299_p0 }
   0x8   :  { %307 = shalt.err (!%p304_p2)
}
   0x9   :  { %s308_s18 = scalar_lea.vmem %s16_s10, 256  ;;  %p313_p4 = scmp.lt.s32.totalorder %s16_s10, %s16_s10 }
   0xa   :  { %p309_p3 = scmp.ne.s32.totalorder %s16_s10, %s308_s18  ;;  %p314_p5 = scmp.lt.s32.totalorder %s308_s18, %s308_s18 }
   0xc   :  { %p315_p6 = por %p314_p5, %p313_p4 }
   0xe   :  { %p316_p7 = pnand %p315_p6, %p309_p3 }
  0x10   :  { %319 = shalt.err (!%p316_p7)
}
  0x11   :  { %s371_s19 = smov 128   ;;  %s372_s20 = smov 8  }
  0x12   :  { %21 = dma.hbm_to_vmem [thread:$0]  %s439_s0, 256, %s16_s10, [#allocation3], %s371_s19, %s371_s19, %s372_s20  }
  0x13   :  { %s373_s23 = smov [#allocation5]   ;;  %s320_s27 = scalar_lea.hbm %s440_s1, 1536 }
  0x14   :  { %s27_s24 = sshll.u32 %s373_s23, 4  ;;  %p321_p8 = scmp.ne.s32.totalorder %s440_s1, %s320_s27  ;;  %s28_s24 = int_to_ptr.vmem [resolvable:$true] %s27_s24 }
  0x15   :  { %p324_p9 = scmp.lt.u32.totalorder %s320_s27, %s440_s1 }
  0x17   :  { %p326_p10 = pnand %p324_p9, %p321_p8 }
  0x19   :  { %329 = shalt.err (!%p326_p10)
}
  0x1a   :  { %s330_s4 = scalar_lea.vmem %s28_s24, 1536  ;;  %p335_p12 = scmp.lt.s32.totalorder %s28_s24, %s28_s24 }
  0x1b   :  { %p331_p11 = scmp.ne.s32.totalorder %s28_s24, %s330_s4  ;;  %p336_p13 = scmp.lt.s32.totalorder %s330_s4, %s330_s4 }
  0x1d   :  { %p337_p0 = por %p336_p13, %p335_p12 }
  0x1f   :  { %p338_p1 = pnand %p337_p0, %p331_p11 }
  0x21   :  { %341 = shalt.err (!%p338_p1)
}
  0x22   :  { %33 = dma.hbm_to_vmem [thread:$0]  %s440_s1, 1536, %s28_s24, [#allocation6], %s371_s19, %s371_s19, %s372_s20  }
  0x23   :  { %364 = dma.done.wait [#allocation3], 256  }
  0x24   :  { %365 = vsyncadd [#allocation3], 4294967040 }
  0x25   :  { %366 = dma.done.wait [#allocation6], 1536  }
  0x26   :  { %367 = vsyncadd [#allocation6], 4294965760  ;;  %vm56_vm0 = vcmask 261120   ;;  %v40_v0 = vld [vmem:[#allocation5] sm:$0xff]  ;;  %v41_v1 = vld [vmem:[#allocation5 + $0x8] sm:$0xff]  ;;  %s374_s1 = smov [#allocation7]  }
  0x27   :  { %v42_v2 = vld [vmem:[#allocation5 + $0x10] sm:$0xff]  ;;  %v277_v3 = vpack.c.bf16 %v41_v1, %v40_v0  ;;  %v43_v4 = vld [vmem:[#allocation5 + $0x18] sm:$0xff]  ;;  %v44_v7 = vld [vmem:[#allocation5 + $0x20] sm:$0xff]  ;;  %s226_s6 = sshll.u32 %s374_s1, 4  ;;  %s227_s6 = int_to_ptr.vmem [resolvable:$true] %s226_s6 }
  0x28   :  { %v50_v5 = vld [vmem:[#allocation2] sm:$0xff]  ;;  %v281_v6 = vpack.c.bf16 %v43_v4, %v42_v2  ;;  %v45_v8 = vld [vmem:[#allocation5 + $0x28] sm:$0xff]  ;;  %v47_v11 = vld [vmem:[#allocation5 + $0x38] sm:$0xff]  ;;  %s342_s7 = scalar_lea.vmem %s227_s6, 256  ;;  %p347_p3 = scmp.lt.s32.totalorder %s227_s6, %s227_s6 }
  0x29   :  { %263 = vmatprep.mubr.msk.f32.mxu0 %vm56_vm0, %v50_v5  ;;  %v46_v9 = vld [vmem:[#allocation5 + $0x30] sm:$0xff]  ;;  %278 = vmatprep.subr.bf16.mxu0 %v277_v3  ;;  %v285_v10 = vpack.c.bf16 %v45_v8, %v44_v7  ;;  %v51_v13 = vld [vmem:[#allocation2 + $0x8] sm:$0xff]  ;;  %v239_v14 = vld [vmem:[#allocation5 + $0x40] ss:$0 sm:$0xff]  ;;  %p343_p2 = scmp.ne.s32.totalorder %s227_s6, %s342_s7  ;;  %p348_p4 = scmp.lt.s32.totalorder %s342_s7, %s342_s7 }
  0x2a   :  { %280 = vmatpush3.bf16.msra.mxu0 %v277_v3  ;;  %v289_v12 = vpack.c.bf16 %v47_v11, %v46_v9  ;;  %v242_v21 = vld [vmem:[#allocation5 + $0x50] ss:$0 sm:$0xff] }
  0x2b   :  { %282 = vmatprep.subr.bf16.mxu0 %v281_v6  ;;  %286 = vmatprep.subr.bf16.mxu1 %v285_v10  ;;  %p349_p5 = por %p348_p4, %p347_p3 }
  0x2c   :  { %288 = vmatpush3.bf16.xpose.msra.mxu1 %v285_v10 }
  0x2d   :  { %290 = vmatprep.subr.bf16.mxu1 %v289_v12  ;;  %p350_p6 = pnand %p349_p5, %p343_p2 }
  0x2e   :  { %284 = vmatpush3.bf16.msra.mxu0 %v281_v6 }
  0x31   :  { %264 = vmatmul.mubr.msk.f32.vlgmr.msra.gmra.mrb[0].mxu0 %vm56_vm0, %v51_v13 }
  0x34   :  { %292 = vmatpush3.bf16.xpose.msra.mxu1 %v289_v12 }
 0x104   :  { %v265_v15 = vpop.f32.mrb[0].mxu0 }
 0x105   :  { %v135_v16 = vadd.f32 %v265_v15, %v239_v14  ;;  %v129_v17 = vpop.f32.mrb[1].mxu0 }
 0x106   :  { %v130_v18 = vadd.f32 %v239_v14, %v129_v17 }
 0x107   :  { %v139_v20 = vmax.f32 %v135_v16, 0.0 }
 0x108   :  { %v138_v19 = vmax.f32 %v130_v18, 0.0 }
 0x10a   :  { %274 = vmatprep.mubr.f32.mxu1 %v138_v19 }
 0x10b   :  { %275 = vmatmul.mubr.f32.vlgmr.msra.gmra.mrb[0].mxu1 %v139_v20 }
 0x1de   :  { %v276_v22 = vpop.f32.mrb[0].mxu1 }
 0x1df   :  { %v216_v23 = vadd.f32 %v276_v22, %v242_v21  ;;  %v210_v24 = vpop.f32.mrb[1].mxu1 }
 0x1e0   :  { %v211_v25 = vadd.f32 %v242_v21, %v210_v24 }
 0x1e1   :  { %220 = vst.msk [vmem:[#allocation7 + $0x8] sm:$0xff] %vm56_vm0, %v216_v23 }
 0x1e2   :  { %219 = vst.msk [vmem:[#allocation7] sm:$0xff] %vm56_vm0, %v211_v25 }
 0x1e3   :  { %353 = shalt.err (!%p350_p6)
}
 0x1e4   :  { %s354_s10 = scalar_lea.hbm %s441_s2, 256 }
 0x1e5   :  { %p355_p7 = scmp.ne.s32.totalorder %s441_s2, %s354_s10  ;;  %p358_p8 = scmp.lt.u32.totalorder %s354_s10, %s441_s2 }
 0x1e7   :  { %p360_p9 = pnand %p358_p8, %p355_p7 }
 0x1e9   :  { %363 = shalt.err (!%p360_p9)
}
 0x1ea   :  { %232 = dma.vmem_to_hbm [thread:$0]  %s227_s6, 256, %s441_s2, [#allocation4], %s371_s19, %s371_s19, %s372_s20  }
 0x1eb   :  { %368 = dma.done.wait [#allocation4], 256  }
 0x1ec   :  { %369 = vsyncadd [#allocation4], 4294967040 }
 0x1ed   :  { %236 = vsyncpa [#allocation3], 1 }
 0x1ee   :  { %237 = vsyncpa [#allocation6], 1 }
 0x1ef   :  { %238 = vsyncpa [#allocation4], 1 }

</bundles_post_ra>
